<compile_context>
chip_gen: v6e
topology: v6e:2x2x1
jax: 0.10.0
libtpu: 0.0.40
codegen_flags: <defaults>
</compile_context>

<pallas_src>
import functools

import jax
import jax.numpy as jnp
from jax import lax
from jax.experimental import pallas as pl
from jax.experimental.pallas import tpu as pltpu


def _matmul_bn_act_kernel(p_ref, w_ref, b_ref, o_ref, *, cout, act):
    """Fused (im2col-patch @ folded-weights) + BN bias + activation.

    p_ref : (row_tile, K)        im2col patches (K = KH*KW*Cin), compute dtype
    w_ref : (K, Cout_pad)        BN-scale-folded weights, zero-padded to 128 lanes
    b_ref : (1, Cout)            folded BN bias, f32
    o_ref : (row_tile, Cout)     unpadded output block (masked store, no 16x pad)
    """
    # Single MXU contraction; f32 accumulate.  The 128-lane-wide result exists
    # only in registers/VMEM; HBM sees only the valid Cout columns.
    acc = jnp.dot(p_ref[...], w_ref[...], preferred_element_type=jnp.float32)

    y = acc[:, :cout] + b_ref[...]            # epilogue on valid lanes only, f32
    if act == "relu":
        y = jnp.maximum(y, 0.0)
    elif act == "hard_swish":
        # x * relu6(x + 3) / 6
        y = y * jnp.clip(y + 3.0, 0.0, 6.0) * (1.0 / 6.0)
    # act is None -> identity

    o_ref[...] = y.astype(o_ref.dtype)


def conv_bn_act(x_nchw, weight, gamma, beta, running_mean, running_var, *,
                stride=1, padding=0, groups=1, act=None, eps=1e-5,
                compute_dtype=jnp.bfloat16, out_dtype=None, row_tile=None):
    """Pallas implementation of ConvBNACT.forward (NCHW in, NCHW out).

    Note: output dtype follows `x_nchw.dtype` unless `out_dtype` is given
    (the PyTorch module returns the conv dtype; pass out_dtype explicitly if
    you feed bf16 activations but want f32 out).
    """
    assert groups == 1, "groups=1 only"   # TODO(synk): grouped conv

    n, cin, h, w = x_nchw.shape
    cout, cin_w, kh, kw = weight.shape
    assert cin_w == cin
    ho = (h + 2 * padding - kh) // stride + 1
    wo = (w + 2 * padding - kw) // stride + 1
    k_dim = kh * kw * cin
    cout_pad = ((cout + 127) // 128) * 128          # pads the (tiny) weights only

    # --- fold eval-mode BN into the conv weights and a single bias (f32) ---
    scale = (gamma.astype(jnp.float32) /
             jnp.sqrt(running_var.astype(jnp.float32) + eps))               # (Cout,)
    bias = beta.astype(jnp.float32) - running_mean.astype(jnp.float32) * scale

    w_hwio = jnp.transpose(weight, (2, 3, 1, 0)).astype(jnp.float32) * scale
    w_mat = w_hwio.reshape(k_dim, cout)
    w_mat = jnp.pad(w_mat, ((0, 0), (0, cout_pad - cout))).astype(compute_dtype)
    b_mat = bias.reshape(1, cout)                                            # f32

    # --- wrapper-side im2col (small-Cin path): (N*Ho*Wo, KH*KW*Cin) patches ---
    x_nhwc = jnp.transpose(x_nchw, (0, 2, 3, 1)).astype(compute_dtype)
    x_pad = jnp.pad(
        x_nhwc, ((0, 0), (padding, padding), (padding, padding), (0, 0)))
    pieces = [
        x_pad[:, ih: ih + stride * (ho - 1) + 1: stride,
                 iw: iw + stride * (wo - 1) + 1: stride, :]
        for ih in range(kh) for iw in range(kw)
    ]                                                # each (N, Ho, Wo, Cin)
    patches = jnp.stack(pieces, axis=3)              # (N, Ho, Wo, KH*KW, Cin)
    patches = patches.reshape(n * ho * wo, k_dim)    # K order = (ih, iw, ci)

    # --- row tiling: one "parallel" grid axis, >=4 steps when possible ---
    r = n * ho * wo
    if row_tile is None:
        row_tile = 512
        while row_tile > 16 and pl.cdiv(r, row_tile) < 4:
            row_tile //= 2
    r_pad = pl.cdiv(r, row_tile) * row_tile
    if r_pad != r:
        patches = jnp.pad(patches, ((0, r_pad - r), (0, 0)))

    kernel = functools.partial(_matmul_bn_act_kernel, cout=cout, act=act)
    o_dtype = out_dtype if out_dtype is not None else x_nchw.dtype

    out = pl.pallas_call(
        kernel,
        out_shape=jax.ShapeDtypeStruct((r_pad, cout), o_dtype),
        grid=(r_pad // row_tile,),
        in_specs=[
            pl.BlockSpec((row_tile, k_dim), lambda i: (i, 0)),
            pl.BlockSpec((k_dim, cout_pad), lambda i: (0, 0)),
            pl.BlockSpec((1, cout), lambda i: (0, 0)),
        ],
        out_specs=pl.BlockSpec((row_tile, cout), lambda i: (i, 0)),
        compiler_params=pltpu.CompilerParams(
            dimension_semantics=("parallel",),
            # sized for v7x's 64 MiB physical VMEM; blocks here are far smaller
            vmem_limit_bytes=48 * 1024 * 1024,
        ),
    )(patches, w_mat, b_mat)

    # restore NCHW to match the PyTorch module.
    out = out[:r].reshape(n, ho, wo, cout)
    return jnp.transpose(out, (0, 3, 1, 2))


def _reference(x_nchw, weight, gamma, beta, running_mean, running_var, *,
               stride, padding, act, eps=1e-5, compute_dtype=jnp.float32):
    """Pure-JAX reference (lax conv + folded BN + act), same input rounding."""
    scale = gamma / jnp.sqrt(running_var + eps)
    bias = beta - running_mean * scale
    w_folded = weight * scale[:, None, None, None]
    xq = x_nchw.astype(compute_dtype).astype(jnp.float32)
    wq = w_folded.astype(compute_dtype).astype(jnp.float32)
    y = lax.conv_general_dilated(
        xq, wq, window_strides=(stride, stride),
        padding=[(padding, padding), (padding, padding)],
        dimension_numbers=("NCHW", "OIHW", "NCHW"),
        precision=lax.Precision.HIGHEST)
    y = y + bias[None, :, None, None]
    if act == "relu":
        y = jnp.maximum(y, 0.0)
    elif act == "hard_swish":
        y = y * jnp.clip(y + 3.0, 0.0, 6.0) / 6.0
    return y


if __name__ == "__main__":
    # ConvBNACT(in_channels=4, out_channels=8, kernel_size=3, stride=1,
    #           padding=1, groups=1, act='hard_swish')
    N, CIN, H, W = 2, 4, 16, 16
    COUT, K, PAD = 8, 3, 1

    key = jax.random.PRNGKey(0)
    k_x, k_w, k_g, k_b, k_m, k_v, k_w1 = jax.random.split(key, 7)

    x = jax.random.normal(k_x, (N, CIN, H, W), jnp.float32)
    weight = 0.1 * jax.random.normal(k_w, (COUT, CIN, K, K), jnp.float32)
    gamma = 1.0 + 0.1 * jax.random.normal(k_g, (COUT,), jnp.float32)
    beta = 0.1 * jax.random.normal(k_b, (COUT,), jnp.float32)
    running_mean = 0.1 * jax.random.normal(k_m, (COUT,), jnp.float32)
    running_var = jax.random.uniform(k_v, (COUT,), jnp.float32, 0.5, 1.5)

    # --- 3x3, pad=1, hard_swish, bf16 MXU inputs (default) ---
    out = conv_bn_act(x, weight, gamma, beta, running_mean, running_var,
                      stride=1, padding=PAD, groups=1, act="hard_swish",
                      compute_dtype=jnp.bfloat16)
    out = jax.block_until_ready(out)
    ref = _reference(x, weight, gamma, beta, running_mean, running_var,
                     stride=1, padding=PAD, act="hard_swish",
                     compute_dtype=jnp.bfloat16)
    assert out.shape == (N, COUT, H, W)
    assert jnp.allclose(out, ref, atol=5e-3, rtol=5e-3)

    # --- 1x1, pad=0, ReLU, full f32 compute path ---
    weight1 = 0.1 * jax.random.normal(k_w1, (COUT, CIN, 1, 1), jnp.float32)
    out1 = conv_bn_act(x, weight1, gamma, beta, running_mean, running_var,
                       stride=1, padding=0, groups=1, act="relu",
                       compute_dtype=jnp.float32)
    out1 = jax.block_until_ready(out1)
    ref1 = _reference(x, weight1, gamma, beta, running_mean, running_var,
                      stride=1, padding=0, act="relu")
    assert out1.shape == (N, COUT, H, W)
    assert jnp.allclose(out1, ref1, atol=2e-4, rtol=2e-4)

    # --- 3x3, stride=2, pad=1, ReLU, f32 compute path ---
    out2 = conv_bn_act(x, weight, gamma, beta, running_mean, running_var,
                       stride=2, padding=PAD, groups=1, act="relu",
                       compute_dtype=jnp.float32)
    out2 = jax.block_until_ready(out2)
    ref2 = _reference(x, weight, gamma, beta, running_mean, running_var,
                      stride=2, padding=PAD, act="relu")
    assert out2.shape == (N, COUT, H // 2, W // 2)
    assert jnp.allclose(out2, ref2, atol=2e-4, rtol=2e-4)

    print("KERNEL_OK")
</pallas_src>

<mosaic_0001>
module attributes {stable_mosaic.version = 11 : i64} {
  func.func @_matmul_bn_act_kernel(%arg0: i32, %arg1: memref<128x36xbf16, #tpu.memory_space<vmem>>, %arg2: memref<36x128xbf16, #tpu.memory_space<vmem>>, %arg3: memref<1x8xf32, #tpu.memory_space<vmem>>, %arg4: memref<128x8xf32, #tpu.memory_space<vmem>>) attributes {dimension_semantics = [#tpu.dimension_semantics<parallel>], iteration_bounds = array<i64: 4>, scalar_prefetch = 0 : i64, scratch_operands = 0 : i64, tpu.core_type = #tpu.core_type<tc>, window_params = [{transform_indices = @transform_0, window_bounds = array<i64: 128, 36>}, {pipeline_mode = #tpu.pipeline_mode<synchronous>, transform_indices = @transform_1, window_bounds = array<i64: 36, 128>}, {pipeline_mode = #tpu.pipeline_mode<synchronous>, transform_indices = @transform_2, window_bounds = array<i64: 1, 8>}, {transform_indices = @transform_3, window_bounds = array<i64: 128, 8>}]} {
    %c0 = arith.constant 0 : index
    %c0_0 = arith.constant 0 : index
    %0 = vector.load %arg1[%c0, %c0_0] : memref<128x36xbf16, #tpu.memory_space<vmem>>, vector<128x36xbf16>
    %c0_1 = arith.constant 0 : index
    %c0_2 = arith.constant 0 : index
    %1 = vector.load %arg2[%c0_1, %c0_2] : memref<36x128xbf16, #tpu.memory_space<vmem>>, vector<36x128xbf16>
    %cst = arith.constant dense<0.000000e+00> : vector<128x128xf32>
    %2 = tpu.matmul %0, %1, %cst {dimension_numbers = #tpu.dot_dimension_numbers<[1], [0], [0], [1], [0, 0, 1, 1], [], []>} : vector<128x36xbf16>, vector<36x128xbf16>, vector<128x128xf32> -> vector<128x128xf32>
    %3 = vector.extract_strided_slice %2 {offsets = [0, 0], sizes = [128, 8], strides = [1, 1]} : vector<128x128xf32> to vector<128x8xf32>
    %c0_3 = arith.constant 0 : index
    %c0_4 = arith.constant 0 : index
    %4 = vector.load %arg3[%c0_3, %c0_4] : memref<1x8xf32, #tpu.memory_space<vmem>>, vector<1x8xf32>
    %5 = vector.broadcast %4 : vector<1x8xf32> to vector<128x8xf32>
    %6 = arith.addf %3, %5 : vector<128x8xf32>
    %cst_5 = arith.constant 3.000000e+00 : f32
    %7 = vector.broadcast %cst_5 : f32 to vector<128x8xf32>
    %8 = arith.addf %6, %7 : vector<128x8xf32>
    %cst_6 = arith.constant 0.000000e+00 : f32
    %cst_7 = arith.constant 6.000000e+00 : f32
    %9 = vector.broadcast %cst_6 : f32 to vector<128x8xf32>
    %10 = arith.maximumf %9, %8 : vector<128x8xf32>
    %11 = vector.broadcast %cst_7 : f32 to vector<128x8xf32>
    %12 = arith.minimumf %11, %10 : vector<128x8xf32>
    %13 = arith.mulf %6, %12 : vector<128x8xf32>
    %cst_8 = arith.constant 0.166666672 : f32
    %14 = vector.broadcast %cst_8 : f32 to vector<128x8xf32>
    %15 = arith.mulf %13, %14 : vector<128x8xf32>
    %c0_9 = arith.constant 0 : index
    %c0_10 = arith.constant 0 : index
    %16 = vector.load %arg4[%c0_9, %c0_10] : memref<128x8xf32, #tpu.memory_space<vmem>>, vector<128x8xf32>
    tpu.vector_store %arg4[%c0_9, %c0_10], %15 {strides = array<i32>} : memref<128x8xf32, #tpu.memory_space<vmem>>, vector<128x8xf32>,
    return
  }
  func.func @transform_0(%arg0: i32) -> (i32, i32) {
    %c0_i32 = arith.constant 0 : i32
    %c0_i32_0 = arith.constant 0 : i32
    return %arg0, %c0_i32 : i32, i32
  }
  func.func @transform_1(%arg0: i32) -> (i32, i32) {
    %c0_i32 = arith.constant 0 : i32
    %c0_i32_0 = arith.constant 0 : i32
    %c0_i32_1 = arith.constant 0 : i32
    return %c0_i32, %c0_i32_0 : i32, i32
  }
  func.func @transform_2(%arg0: i32) -> (i32, i32) {
    %c0_i32 = arith.constant 0 : i32
    %c0_i32_0 = arith.constant 0 : i32
    %c0_i32_1 = arith.constant 0 : i32
    return %c0_i32, %c0_i32_0 : i32, i32
  }
  func.func @transform_3(%arg0: i32) -> (i32, i32) {
    %c0_i32 = arith.constant 0 : i32
    %c0_i32_0 = arith.constant 0 : i32
    return %arg0, %c0_i32 : i32, i32
  }
}

</mosaic_0001>

<bundles_post_ra>
// kernel: tpu_custom_call.1
= control target key start
LH: loop header
LB: loop body
LE: loop exit
PB: predicated region body
PF: predicated region fallthrough
CT: control target
= control target key end

     0   :  { %s672_s12 = smov 0   ;;  %s765_s0 = inlined_call_operand.vmem [shape: bf16[512,36], index: 0, kind: input, shape index: {}]   ;;  %s766_s1 = inlined_call_operand.vmem [shape: bf16[36,128], index: 1, kind: input, shape index: {}]   ;;  %s767_s2 = inlined_call_operand.vmem [shape: f32[1,8], index: 2, kind: input, shape index: {}]   ;;  %s768_s3 = inlined_call_operand.vmem [shape: f32[512,8], index: 3, kind: output, shape index: {}]  }
   0x1 LB: > { %s553_s13 = sadd.s32 4294967295, %s650_s12   ;;  %p557_p0 = scmp.ge.s32.totalorder %s650_s12, 1  ;;  %s650_s12 = sphi %s672_s12, %s13_s12  }
   0x2   : > { %p138_p1 = scmp.lt.s32.totalorder %s650_s12, 5 }
   0x4   : > { %p139_p2 = pnand %p557_p0, %p138_p1 }
   0x5   : > { %s558_s18 = sshll.u32 (!%p139_p2), %s553_s13, 4 }
   0x6   : > { %142 = sbr.rel (%p139_p2) target bundleno = 249 (0xf9), region = 32  ;;  %p163_p3 = scmp.lt.s32.totalorder (!%p139_p2), %s558_s18, 63 }
   0xb   : > { %v633_v0 = vld [vmem:[%s766_s1 + $0x10] ss:$0 sps:$4 sm:$0x33]   ;;  %vm276_vm0 = vcmask 1041408   ;;  %v634_v1 = vld [vmem:[%s766_s1 + $0x8] sm:$0xff]   ;;  %v635_v3 = vld [vmem:[%s766_s1] sm:$0xff]  }
   0xc   : > { %623 = vmatprep.subr.msk.bf16.mxu0 %vm276_vm0, %v633_v0  ;;  %624 = vmatprep.subr.msk.bf16.mxu1 %vm276_vm0, %v633_v0  ;;  %v278_v2 = vsel %vm276_vm0, %v633_v0, 0  ;;  %s770_s18 = smov (!%p163_p3, %s558_s18), 63  ;;  %vm251_vm1 = vcmask 293888   ;;  %v706_v12 = vld [vmem:[%s767_s2] ss:$0 sm:$0xff]  ;;  %vm480_vm2 = vcmask 64512  }
   0xd   : > { %596 = vmatpush3.bf16.msra.mxu0 %v278_v2  ;;  %620 = vmatpush3.bf16.msra.mxu1 %v278_v2  ;;  %s559_s21 = sshll.u32 %s770_s18, 2  ;;  %s561_s27 = sshll.u32 %s770_s18, 3 }
   0xe   : > { %597 = vmatprep.subr.bf16.mxu0 %v634_v1  ;;  %618 = vmatprep.subr.bf16.mxu1 %v634_v1  ;;  %s166_s24 = scalar_lea.vmem %s765_s0, %s559_s21  ;;  %s720_s30 = scalar_lea.vmem %s768_s3, %s561_s27 }
   0xf   : > { %v636_v4 = vld [vmem:[%s166_s24] sm:$0xff]   ;;  %v638_v6 = vld [vmem:[%s166_s24 + $0x8] sm:$0xff]   ;;  %v640_v8 = vld [vmem:[%s166_s24 + $0x10] sm:$0xff]  }
  0x10   : > { %v637_v5 = vld [vmem:[%s166_s24 + $0x20] sm:$0xff]   ;;  %601 = vmatprep.mubr.msk.bf16.mxu0 %vm251_vm1, %v636_v4  ;;  %v639_v7 = vld [vmem:[%s166_s24 + $0x28] sm:$0xff]   ;;  %v641_v9 = vld [vmem:[%s166_s24 + $0x30] sm:$0xff]  }
  0x11   : > { %598 = vmatpush3.bf16.msra.mxu0 %v634_v1  ;;  %621 = vmatpush3.bf16.msra.mxu1 %v634_v1  ;;  %v642_v10 = vld [vmem:[%s166_s24 + $0x18] sm:$0xff]  }
  0x12   : > { %599 = vmatprep.subr.bf16.mxu0 %v635_v3  ;;  %619 = vmatprep.subr.bf16.mxu1 %v635_v3  ;;  %v643_v11 = vld [vmem:[%s166_s24 + $0x38] sm:$0xff]  }
  0x13   : > { %609 = vmatprep.mubr.msk.bf16.mxu1 %vm251_vm1, %v637_v5 }
  0x15   : > { %600 = vmatpush3.bf16.msra.mxu0 %v635_v3  ;;  %622 = vmatpush3.bf16.msra.mxu1 %v635_v3 }
  0x18   : > { %602 = vmatmul.mubr.msk.bf16.vlgmr.msra.gmra.mxu0 %vm251_vm1, %v638_v6  ;;  %610 = vmatmul.mubr.msk.bf16.vlgmr.msra.gmra.mxu1 %vm251_vm1, %v639_v7 }
  0x19   : > { %605 = vmatprep.mubr.msk.bf16.mxu0 %vm251_vm1, %v640_v8  ;;  %613 = vmatprep.mubr.msk.bf16.mxu1 %vm251_vm1, %v641_v9 }
  0x20   : > { %606 = vmatmul.mubr.msk.bf16.gmra.mxu0 %vm251_vm1, %v642_v10  ;;  %614 = vmatmul.mubr.msk.bf16.gmra.mxu1 %vm251_vm1, %v643_v11 }
  0xd8   : > { %v603_v13 = vpop.f32.mrf.mxu0  ;;  %v611_v14 = vpop.f32.mrf.mxu1 }
  0xd9   : > { %v386_v15 = vadd.f32 %v603_v13, %v706_v12  ;;  %v394_v16 = vadd.f32 %v611_v14, %v706_v12 }
  0xda   : > { %v314_v17 = vpop.f32.mrf.mxu0  ;;  %v346_v18 = vpop.f32.mrf.mxu1 }
  0xdb   : > { %v402_v19 = vadd.f32 3.0, %v386_v15  ;;  %v410_v20 = vadd.f32 3.0, %v394_v16  ;;  %v384_v21 = vadd.f32 %v706_v12, %v314_v17  ;;  %v392_v22 = vadd.f32 %v706_v12, %v346_v18 }
  0xdc   : > { %v604_v23 = vpop.f32.mrf.mxu0  ;;  %v612_v24 = vpop.f32.mrf.mxu1 }
  0xdd   : > { %v418_v25 = vmax.f32 %v402_v19, 0.0  ;;  %v426_v26 = vmax.f32 %v410_v20, 0.0  ;;  %v400_v27 = vadd.f32 3.0, %v384_v21  ;;  %v408_v28 = vadd.f32 3.0, %v392_v22 }
  0xde   : > { %v387_v29 = vadd.f32 %v604_v23, %v706_v12  ;;  %v395_v30 = vadd.f32 %v612_v24, %v706_v12  ;;  %v317_v31 = vpop.f32.mrf.mxu0  ;;  %v349_v32 = vpop.f32.mrf.mxu1 }
  0xdf   : > { %v434_v33 = vmin.f32 %v418_v25, 6.0  ;;  %v442_v34 = vmin.f32 %v426_v26, 6.0  ;;  %v416_v35 = vmax.f32 %v400_v27, 0.0  ;;  %v424_v36 = vmax.f32 %v408_v28, 0.0 }
  0xe0   : > { %v403_v37 = vadd.f32 3.0, %v387_v29  ;;  %v411_v38 = vadd.f32 3.0, %v395_v30  ;;  %v385_v39 = vadd.f32 %v706_v12, %v317_v31  ;;  %v393_v40 = vadd.f32 %v706_v12, %v349_v32  ;;  %v607_v41 = vpop.f32.mrf.mxu0  ;;  %v615_v42 = vpop.f32.mrf.mxu1 }
  0xe1   : > { %v450_v43 = vmul.f32 %v434_v33, %v386_v15  ;;  %v458_v44 = vmul.f32 %v442_v34, %v394_v16  ;;  %v432_v45 = vmin.f32 %v416_v35, 6.0  ;;  %v440_v46 = vmin.f32 %v424_v36, 6.0 }
  0xe2   : > { %v419_v47 = vmax.f32 %v403_v37, 0.0  ;;  %v427_v48 = vmax.f32 %v411_v38, 0.0  ;;  %v401_v49 = vadd.f32 3.0, %v385_v39  ;;  %v409_v50 = vadd.f32 3.0, %v393_v40  ;;  %v330_v51 = vpop.f32.mrf.mxu0  ;;  %v362_v52 = vpop.f32.mrf.mxu1 }
  0xe3   : > { %v466_v53 = vmul.f32 0.16666667, %v450_v43  ;;  %v474_v54 = vmul.f32 0.16666667, %v458_v44  ;;  %v448_v55 = vmul.f32 %v432_v45, %v384_v21  ;;  %v456_v56 = vmul.f32 %v440_v46, %v392_v22 }
  0xe4   : > { %v435_v57 = vmin.f32 %v419_v47, 6.0  ;;  %v443_v58 = vmin.f32 %v427_v48, 6.0  ;;  %v417_v59 = vmax.f32 %v401_v49, 0.0  ;;  %v425_v60 = vmax.f32 %v409_v50, 0.0  ;;  %v608_v1 = vpop.f32.mrf.mxu0  ;;  %v616_v2 = vpop.f32.mrf.mxu1 }
  0xe5   : > { %483 = vst.msk [vmem:[%s720_s30 + $0x10] sm:$0xff] %vm480_vm2, %v466_v53  ;;  %491 = vst.msk [vmem:[%s720_s30 + $0x50] sm:$0xff] %vm480_vm2, %v474_v54  ;;  %v464_v61 = vmul.f32 0.16666667, %v448_v55  ;;  %v472_v62 = vmul.f32 0.16666667, %v456_v56  ;;  %v390_v63 = vadd.f32 %v607_v41, %v706_v12  ;;  %v398_v0 = vadd.f32 %v615_v42, %v706_v12 }
  0xe6   : > { %v451_v3 = vmul.f32 %v435_v57, %v387_v29  ;;  %v459_v4 = vmul.f32 %v443_v58, %v395_v30  ;;  %v433_v5 = vmin.f32 %v417_v59, 6.0  ;;  %v441_v6 = vmin.f32 %v425_v60, 6.0  ;;  %v333_v20 = vpop.f32.mrf.mxu0  ;;  %v365_v21 = vpop.f32.mrf.mxu1 }
  0xe7   : > { %481 = vst.msk [vmem:[%s720_s30] sm:$0xff] %vm480_vm2, %v464_v61  ;;  %489 = vst.msk [vmem:[%s720_s30 + $0x40] sm:$0xff] %vm480_vm2, %v472_v62  ;;  %v406_v7 = vadd.f32 3.0, %v390_v63  ;;  %v414_v8 = vadd.f32 3.0, %v398_v0  ;;  %v388_v9 = vadd.f32 %v706_v12, %v330_v51  ;;  %v396_v10 = vadd.f32 %v706_v12, %v362_v52 }
  0xe8   : > { %v467_v11 = vmul.f32 0.16666667, %v451_v3  ;;  %v475_v13 = vmul.f32 0.16666667, %v459_v4  ;;  %v449_v14 = vmul.f32 %v433_v5, %v385_v39  ;;  %v457_v15 = vmul.f32 %v441_v6, %v393_v40 }
  0xe9   : > { %v422_v16 = vmax.f32 %v406_v7, 0.0  ;;  %v430_v17 = vmax.f32 %v414_v8, 0.0  ;;  %v404_v18 = vadd.f32 3.0, %v388_v9  ;;  %v412_v19 = vadd.f32 3.0, %v396_v10 }
  0xea   : > { %484 = vst.msk [vmem:[%s720_s30 + $0x18] sm:$0xff] %vm480_vm2, %v467_v11  ;;  %492 = vst.msk [vmem:[%s720_s30 + $0x58] sm:$0xff] %vm480_vm2, %v475_v13  ;;  %v465_v22 = vmul.f32 0.16666667, %v449_v14  ;;  %v473_v23 = vmul.f32 0.16666667, %v457_v15  ;;  %v391_v24 = vadd.f32 %v608_v1, %v706_v12  ;;  %v399_v25 = vadd.f32 %v616_v2, %v706_v12 }
  0xeb   : > { %v438_v26 = vmin.f32 %v422_v16, 6.0  ;;  %v446_v27 = vmin.f32 %v430_v17, 6.0  ;;  %v420_v28 = vmax.f32 %v404_v18, 0.0  ;;  %v428_v29 = vmax.f32 %v412_v19, 0.0 }
  0xec   : > { %482 = vst.msk [vmem:[%s720_s30 + $0x8] sm:$0xff] %vm480_vm2, %v465_v22  ;;  %490 = vst.msk [vmem:[%s720_s30 + $0x48] sm:$0xff] %vm480_vm2, %v473_v23  ;;  %v407_v30 = vadd.f32 3.0, %v391_v24  ;;  %v415_v31 = vadd.f32 3.0, %v399_v25  ;;  %v389_v32 = vadd.f32 %v706_v12, %v333_v20  ;;  %v397_v33 = vadd.f32 %v706_v12, %v365_v21 }
  0xed   : > { %v454_v34 = vmul.f32 %v438_v26, %v390_v63  ;;  %v462_v35 = vmul.f32 %v446_v27, %v398_v0  ;;  %v436_v36 = vmin.f32 %v420_v28, 6.0  ;;  %v444_v37 = vmin.f32 %v428_v29, 6.0 }
  0xee   : > { %v423_v38 = vmax.f32 %v407_v30, 0.0  ;;  %v431_v39 = vmax.f32 %v415_v31, 0.0  ;;  %v405_v40 = vadd.f32 3.0, %v389_v32  ;;  %v413_v41 = vadd.f32 3.0, %v397_v33 }
  0xef   : > { %v470_v42 = vmul.f32 0.16666667, %v454_v34  ;;  %v478_v43 = vmul.f32 0.16666667, %v462_v35  ;;  %v452_v44 = vmul.f32 %v436_v36, %v388_v9  ;;  %v460_v45 = vmul.f32 %v444_v37, %v396_v10 }
  0xf0   : > { %v439_v46 = vmin.f32 %v423_v38, 6.0  ;;  %v447_v47 = vmin.f32 %v431_v39, 6.0  ;;  %v421_v48 = vmax.f32 %v405_v40, 0.0  ;;  %v429_v12 = vmax.f32 %v413_v41, 0.0 }
  0xf1   : > { %487 = vst.msk [vmem:[%s720_s30 + $0x30] sm:$0xff] %vm480_vm2, %v470_v42  ;;  %495 = vst.msk [vmem:[%s720_s30 + $0x70] sm:$0xff] %vm480_vm2, %v478_v43  ;;  %v468_v49 = vmul.f32 0.16666667, %v452_v44  ;;  %v476_v50 = vmul.f32 0.16666667, %v460_v45 }
  0xf2   : > { %v455_v51 = vmul.f32 %v439_v46, %v391_v24  ;;  %v463_v52 = vmul.f32 %v447_v47, %v399_v25  ;;  %v437_v53 = vmin.f32 %v421_v48, 6.0  ;;  %v445_v54 = vmin.f32 %v429_v12, 6.0 }
  0xf3   : > { %485 = vst.msk [vmem:[%s720_s30 + $0x20] sm:$0xff] %vm480_vm2, %v468_v49  ;;  %493 = vst.msk [vmem:[%s720_s30 + $0x60] sm:$0xff] %vm480_vm2, %v476_v50 }
  0xf4   : > { %v471_v55 = vmul.f32 0.16666667, %v455_v51  ;;  %v479_v56 = vmul.f32 0.16666667, %v463_v52  ;;  %v453_v57 = vmul.f32 %v437_v53, %v389_v32  ;;  %v461_v58 = vmul.f32 %v445_v54, %v397_v33 }
  0xf6   : > { %488 = vst.msk [vmem:[%s720_s30 + $0x38] sm:$0xff] %vm480_vm2, %v471_v55  ;;  %496 = vst.msk [vmem:[%s720_s30 + $0x78] sm:$0xff] %vm480_vm2, %v479_v56  ;;  %v469_v59 = vmul.f32 0.16666667, %v453_v57  ;;  %v477_v60 = vmul.f32 0.16666667, %v461_v58 }
  0xf8   : > { %486 = vst.msk [vmem:[%s720_s30 + $0x28] sm:$0xff] %vm480_vm2, %v469_v59  ;;  %494 = vst.msk [vmem:[%s720_s30 + $0x68] sm:$0xff] %vm480_vm2, %v477_v60 }
  0xf9 PF: > { %s13_s12 = sadd.s32 1, %s650_s12  }
  0xfa   : > { %p10_p4 = scmp.ge.s32.totalorder %s13_s12, 6  }
  0xfc   :  { %12 = sbr.rel (!%p10_p4) target bundleno = 1 (0x1), region = 62 }

</bundles_post_ra>
